<compile_context>
chip_gen: v7x
topology: tpu7x:2x2x1
jax: 0.10.0
libtpu: 0.0.40
codegen_flags: <defaults>
</compile_context>

<pallas_src>
import jax
import jax.numpy as jnp
import numpy as np
from jax import lax
from jax.experimental import pallas as pl
from jax.experimental.pallas import tpu as pltpu

LANES = 128


def _round8(n):
    return ((n + 7) // 8) * 8


# ------------------------- one-time weight packing ------------------------- #
def prepare_kernel_params(params):
    """Re-layout all weights into a single (R, 128) f32 slab.

    * transposes / column splits / bias folds done once, outside the hot path,
    * every piece zero-padded to 128 lanes, start row aligned to 8 sublanes,
    * the softmax-invariant aspect branch of the attention score is dropped
      (exact -- see module docstring).
    """
    D = params["w_v"].shape[0]
    H = params["w_hh"].shape[1]
    C = params["w_dec"].shape[0]

    f32 = lambda a: jnp.asarray(a, jnp.float32)
    pieces = [
        ("w_ih_w_t", f32(params["w_ih"][:, :D].T)),                        # (D, 4H)
        ("w_ih_a_t", f32(params["w_ih"][:, D:].T)),                        # (D, 4H)
        ("b_g",      f32((params["b_ih"] + params["b_hh"])[None, :])),     # (1, 4H)
        ("w_hh_t",   f32(params["w_hh"].T)),                               # (H, 4H)
        ("wh_t",     f32(params["w_h"].T)),                                # (H, H)
        ("bh",       f32(params["b_h"][None, :])),                         # (1, H)
        ("w_a",      f32(params["w_attn"][:, :H])),                        # (1, H)
        ("wpx_t",    f32(jnp.concatenate([params["w_p"].T,
                                          params["w_x"].T], axis=0))),     # (2H, H)
        ("bpx",      f32((params["b_p"] + params["b_x"])[None, :])),       # (1, H)
        ("wd_t",     f32(params["w_dec"].T)),                              # (H, C)
        ("bd",       f32(params["b_dec"][None, :])),                       # (1, C)
    ]

    rows = {}
    blocks = []
    offset = 0
    for name, a in pieces:
        r, w = a.shape
        assert w <= LANES, (name, a.shape)
        rows[name] = (offset, r, w)
        rpad = _round8(r)
        blocks.append(jnp.pad(a, ((0, rpad - r), (0, LANES - w))))
        offset += rpad
    slab = jnp.concatenate(blocks, axis=0)                                 # (R, 128)

    return {
        "slab": slab,
        "ae": f32(params["ae"])[:, None, :],   # (A, 1, D) aspect embedding table
        "rows": rows,                          # static python metadata
        "dims": (D, H, C),
    }


# ------------------------------ kernel builder ------------------------------ #
def build_forward(kp):
    rows = kp["rows"]
    D, H, C = kp["dims"]
    R = kp["slab"].shape[0]

    def kernel(asp_idx_ref, ae_ref, words_ref, slab_ref, out_ref):
        del asp_idx_ref  # consumed only by ae_ref's index_map (scalar prefetch)
        L = words_ref.shape[0]

        def sl(name):                     # static slab view -> exact-width load
            off, r, w = rows[name]
            return slab_ref[off:off + r, :w]

        def sl_full(name):                # static slab view -> full 128 lanes
            off, r, _ = rows[name]
            return slab_ref[off:off + r, :]

        asp = ae_ref[0]                                                # (1, D)

        # Input contribution to all gates for every timestep: one (L,D)@(D,4H)
        # matmul for the words plus a single (1,D)@(D,4H) aspect term that is
        # identical for all timesteps (broadcast over L).
        xg = (
            jnp.dot(words_ref[...], sl("w_ih_w_t"),
                    preferred_element_type=jnp.float32)
            + jnp.dot(asp, sl("w_ih_a_t"), preferred_element_type=jnp.float32)
            + sl("b_g")
        )                                                              # (L, 4H)
        w_hh_t = sl("w_hh_t")                                          # (H, 4H)

        # Sequential LSTM recurrence (PyTorch gate order i, f, g, o), fully
        # unrolled; states and per-step outputs stay in vregs.
        h = jnp.zeros((1, H), jnp.float32)
        c = jnp.zeros((1, H), jnp.float32)
        hs = []
        # TODO(synk): switch to lax.fori_loop + (L,H) VMEM accumulator if L is
        # ever raised beyond ~16-32 (vreg live ranges / spills).
        for t in range(L):
            gates = xg[t:t + 1, :] + jnp.dot(
                h, w_hh_t, preferred_element_type=jnp.float32)         # (1, 4H)
            sig = jax.nn.sigmoid(gates)     # full-lane-width EUP pass
            th = jnp.tanh(gates)            # full-lane-width EUP pass
            i = sig[:, 0:H]
            f = sig[:, H:2 * H]
            g = th[:, 2 * H:3 * H]
            o = sig[:, 3 * H:4 * H]
            c = f * c + i * g
            h = o * jnp.tanh(c)
            hs.append(h)
        h_fin = h
        out_seq = jnp.concatenate(hs, axis=0)                          # (L, H)

        # Attention.  The aspect half of the score (tanh(W_v asp) . w_v + b)
        # is constant over L and cancels under softmax(dim=0) -> dropped.
        m_h = jnp.tanh(
            jnp.dot(out_seq, sl("wh_t"), preferred_element_type=jnp.float32)
            + sl("bh"))                                                # (L, H)
        scores = jnp.sum(m_h * sl("w_a"), axis=1, keepdims=True)       # (L, 1)

        mx = jnp.max(scores, axis=0, keepdims=True)
        e = jnp.exp(scores - mx)
        denom = jnp.sum(e, axis=0, keepdims=True)
        weights = e * pl.reciprocal(denom, approx=True)                # (L, 1)

        # r = weights^T @ output as broadcast-multiply + sublane reduce.
        r = jnp.sum(weights * out_seq, axis=0, keepdims=True)          # (1, H)

        # Fused W_p(r) + W_x(h_fin): one (1,2H)@(2H,H) matmul.
        rh = jnp.concatenate([r, h_fin], axis=1)                       # (1, 2H)
        r2 = jnp.tanh(
            jnp.dot(rh, sl("wpx_t"), preferred_element_type=jnp.float32)
            + sl("bpx"))                                               # (1, H)

        # Decoder into a lane-padded (1, 128) slab (padded cols are exact 0).
        out_ref[...] = (
            jnp.dot(r2, sl_full("wd_t"), preferred_element_type=jnp.float32)
            + sl_full("bd"))

    def forward(slab, ae3, inputs, aspect):
        """inputs: (L, 1, D) f32, aspect: (1,) int32 -> (1, C) f32."""
        L = inputs.shape[0]
        words = inputs[:, 0, :]            # contiguous reshape, free under XLA

        out_pad = pl.pallas_call(
            kernel,
            out_shape=jax.ShapeDtypeStruct((1, LANES), jnp.float32),
            grid_spec=pltpu.PrefetchScalarGridSpec(
                num_scalar_prefetch=1,
                grid=(1,),
                in_specs=[
                    # aspect embedding row, gathered via scalar-prefetched idx
                    pl.BlockSpec((1, 1, D), lambda i, asp: (asp[0], 0, 0)),
                    # word embeddings
                    pl.BlockSpec((L, D), lambda i, asp: (0, 0)),
                    # packed parameter slab
                    pl.BlockSpec((R, LANES), lambda i, asp: (0, 0)),
                ],
                out_specs=pl.BlockSpec((1, LANES), lambda i, asp: (0, 0)),
            ),
            compiler_params=pltpu.CompilerParams(
                dimension_semantics=("arbitrary",)),
        )(aspect, ae3, words, slab)
        return out_pad[:, :C]

    return forward


# --------------------------- pure-JAX reference ----------------------------- #
def reference_forward(params, inputs, aspect):
    L, _, D = inputs.shape
    H = params["w_hh"].shape[1]
    asp_emb = params["ae"][aspect[0]][None, :]
    x = jnp.concatenate(
        [inputs[:, 0, :], jnp.broadcast_to(asp_emb, (L, D))], axis=1)

    def step(carry, x_t):
        h, c = carry
        gates = (x_t[None, :] @ params["w_ih"].T + params["b_ih"]
                 + h @ params["w_hh"].T + params["b_hh"])
        i = jax.nn.sigmoid(gates[:, 0:H])
        f = jax.nn.sigmoid(gates[:, H:2 * H])
        g = jnp.tanh(gates[:, 2 * H:3 * H])
        o = jax.nn.sigmoid(gates[:, 3 * H:4 * H])
        c = f * c + i * g
        h = o * jnp.tanh(c)
        return (h, c), h[0]

    h0 = jnp.zeros((1, H), jnp.float32)
    (h_fin, _), out_seq = lax.scan(step, (h0, h0), x)           # out_seq: (L, H)

    asp_rep = jnp.broadcast_to(asp_emb, (L, D))
    M = jnp.tanh(jnp.concatenate(
        [out_seq @ params["w_h"].T + params["b_h"],
         asp_rep @ params["w_v"].T + params["b_v"]], axis=1))
    scores = M @ params["w_attn"].T + params["b_attn"]          # (L, 1)
    weights = jax.nn.softmax(scores, axis=0).T                  # (1, L)
    r = weights @ out_seq                                       # (1, H)
    r = jnp.tanh(r @ params["w_p"].T + params["b_p"]
                 + h_fin @ params["w_x"].T + params["b_x"])
    return r @ params["w_dec"].T + params["b_dec"]


# ------------------------------- params ------------------------------------ #
def init_params(key, input_size, hidden_size, output_size, aspect_size):
    D, H, C, A = input_size, hidden_size, output_size, aspect_size
    keys = jax.random.split(key, 20)
    u = lambda k, shape, fan: jax.random.uniform(
        k, shape, jnp.float32, -1.0 / np.sqrt(fan), 1.0 / np.sqrt(fan))
    return {
        "ae":     jax.random.normal(keys[0], (A, D), jnp.float32),
        "w_ih":   u(keys[1], (4 * H, 2 * D), H),
        "w_hh":   u(keys[2], (4 * H, H), H),
        "b_ih":   u(keys[3], (4 * H,), H),
        "b_hh":   u(keys[4], (4 * H,), H),
        "w_h":    u(keys[5], (H, H), H),
        "b_h":    u(keys[6], (H,), H),
        "w_v":    u(keys[7], (D, D), D),
        "b_v":    u(keys[8], (D,), D),
        "w_attn": u(keys[9], (1, H + D), H + D),
        "b_attn": u(keys[10], (1,), H + D),
        "w_p":    u(keys[11], (H, H), H),
        "b_p":    u(keys[12], (H,), H),
        "w_x":    u(keys[13], (H, H), H),
        "b_x":    u(keys[14], (H,), H),
        "w_dec":  u(keys[15], (C, H), H),
        "b_dec":  u(keys[16], (C,), H),
    }


if __name__ == "__main__":
    L, D, H, C, A = 8, 32, 32, 3, 5   # seq len, input_size, hidden, output, aspect vocab

    key = jax.random.PRNGKey(0)
    k_p, k_x = jax.random.split(key)
    params = init_params(k_p, D, H, C, A)

    inputs = jax.random.normal(k_x, (L, 1, D), jnp.float32)   # (length, batch=1, input_size)
    aspect = jnp.array([2], dtype=jnp.int32)                  # aspect index

    # One-time weight re-layout into the packed slab (outside the hot path).
    kp = prepare_kernel_params(params)
    jax.block_until_ready((kp["slab"], kp["ae"]))

    fwd = jax.jit(build_forward(kp))
    out = jax.block_until_ready(fwd(kp["slab"], kp["ae"], inputs, aspect))

    ref = jax.block_until_ready(reference_forward(params, inputs, aspect))

    assert out.shape == (1, C), out.shape
    np.testing.assert_allclose(np.asarray(out), np.asarray(ref), rtol=2e-3, atol=2e-3)
    print("KERNEL_OK")
</pallas_src>

<mosaic_0001>
module attributes {stable_mosaic.version = 11 : i64} {
  func.func @kernel(%arg0: i32, %arg1: memref<1xi32, #tpu.memory_space<smem>>, %arg2: memref<1x1x32xf32, #tpu.memory_space<vmem>>, %arg3: memref<8x32xf32, #tpu.memory_space<vmem>>, %arg4: memref<264x128xf32, #tpu.memory_space<vmem>>, %arg5: memref<1x128xf32, #tpu.memory_space<vmem>>) attributes {dimension_semantics = [#tpu.dimension_semantics<arbitrary>], iteration_bounds = array<i64: 1>, scalar_prefetch = 1 : i64, scratch_operands = 0 : i64, tpu.core_type = #tpu.core_type<tc>, window_params = [{transform_indices = @transform_0, window_bounds = array<i64: 1, 1, 32>}, {pipeline_mode = #tpu.pipeline_mode<synchronous>, transform_indices = @transform_1, window_bounds = array<i64: 8, 32>}, {pipeline_mode = #tpu.pipeline_mode<synchronous>, transform_indices = @transform_2, window_bounds = array<i64: 264, 128>}, {pipeline_mode = #tpu.pipeline_mode<synchronous>, transform_indices = @transform_3, window_bounds = array<i64: 1, 128>}]} {
    %c0 = arith.constant 0 : index
    %c0_0 = arith.constant 0 : index
    %c0_1 = arith.constant 0 : index
    %0 = vector.load %arg2[%c0, %c0_0, %c0_1] : memref<1x1x32xf32, #tpu.memory_space<vmem>>, vector<1x1x32xf32>
    %1 = vector.shape_cast %0 : vector<1x1x32xf32> to vector<1x32xf32>
    %c0_2 = arith.constant 0 : index
    %c0_3 = arith.constant 0 : index
    %2 = vector.load %arg3[%c0_2, %c0_3] : memref<8x32xf32, #tpu.memory_space<vmem>>, vector<8x32xf32>
    %c0_4 = arith.constant 0 : index
    %c0_5 = arith.constant 0 : index
    %3 = vector.load %arg4[%c0_4, %c0_5] : memref<264x128xf32, #tpu.memory_space<vmem>>, vector<32x128xf32>
    %cst = arith.constant dense<0.000000e+00> : vector<8x128xf32>
    %4 = tpu.matmul %2, %3, %cst {dimension_numbers = #tpu.dot_dimension_numbers<[1], [0], [0], [1], [0, 0, 1, 1], [], []>} : vector<8x32xf32>, vector<32x128xf32>, vector<8x128xf32> -> vector<8x128xf32>
    %c32 = arith.constant 32 : index
    %c0_6 = arith.constant 0 : index
    %5 = vector.load %arg4[%c32, %c0_6] : memref<264x128xf32, #tpu.memory_space<vmem>>, vector<32x128xf32>
    %cst_7 = arith.constant dense<0.000000e+00> : vector<1x128xf32>
    %6 = tpu.matmul %1, %5, %cst_7 {dimension_numbers = #tpu.dot_dimension_numbers<[1], [0], [0], [1], [0, 0, 1, 1], [], []>} : vector<1x32xf32>, vector<32x128xf32>, vector<1x128xf32> -> vector<1x128xf32>
    %7 = vector.broadcast %6 : vector<1x128xf32> to vector<8x128xf32>
    %8 = arith.addf %4, %7 : vector<8x128xf32>
    %c64 = arith.constant 64 : index
    %c0_8 = arith.constant 0 : index
    %9 = vector.load %arg4[%c64, %c0_8] : memref<264x128xf32, #tpu.memory_space<vmem>>, vector<1x128xf32>
    %10 = vector.broadcast %9 : vector<1x128xf32> to vector<8x128xf32>
    %11 = arith.addf %8, %10 : vector<8x128xf32>
    %c72 = arith.constant 72 : index
    %c0_9 = arith.constant 0 : index
    %12 = vector.load %arg4[%c72, %c0_9] : memref<264x128xf32, #tpu.memory_space<vmem>>, vector<32x128xf32>
    %cst_10 = arith.constant 0.000000e+00 : f32
    %13 = vector.broadcast %cst_10 : f32 to vector<1x32xf32>
    %cst_11 = arith.constant 0.000000e+00 : f32
    %14 = vector.broadcast %cst_11 : f32 to vector<1x32xf32>
    %15 = vector.extract_strided_slice %11 {offsets = [0, 0], sizes = [1, 128], strides = [1, 1]} : vector<8x128xf32> to vector<1x128xf32>
    %cst_12 = arith.constant dense<0.000000e+00> : vector<1x128xf32>
    %16 = tpu.matmul %13, %12, %cst_12 {dimension_numbers = #tpu.dot_dimension_numbers<[1], [0], [0], [1], [0, 0, 1, 1], [], []>} : vector<1x32xf32>, vector<32x128xf32>, vector<1x128xf32> -> vector<1x128xf32>
    %17 = arith.addf %15, %16 : vector<1x128xf32>
    %18 = arith.negf %17 : vector<1x128xf32>
    %19 = math.exp %18 : vector<1x128xf32>
    %cst_13 = arith.constant 1.000000e+00 : f32
    %20 = vector.broadcast %cst_13 : f32 to vector<1x128xf32>
    %21 = arith.addf %20, %19 : vector<1x128xf32>
    %22 = arith.divf %20, %21 : vector<1x128xf32>
    %23 = math.tanh %17 : vector<1x128xf32>
    %24 = vector.extract_strided_slice %22 {offsets = [0, 0], sizes = [1, 32], strides = [1, 1]} : vector<1x128xf32> to vector<1x32xf32>
    %25 = vector.extract_strided_slice %22 {offsets = [0, 32], sizes = [1, 32], strides = [1, 1]} : vector<1x128xf32> to vector<1x32xf32>
    %26 = vector.extract_strided_slice %23 {offsets = [0, 64], sizes = [1, 32], strides = [1, 1]} : vector<1x128xf32> to vector<1x32xf32>
    %27 = vector.extract_strided_slice %22 {offsets = [0, 96], sizes = [1, 32], strides = [1, 1]} : vector<1x128xf32> to vector<1x32xf32>
    %28 = arith.mulf %25, %14 : vector<1x32xf32>
    %29 = arith.mulf %24, %26 : vector<1x32xf32>
    %30 = arith.addf %28, %29 : vector<1x32xf32>
    %31 = math.tanh %30 : vector<1x32xf32>
    %32 = arith.mulf %27, %31 : vector<1x32xf32>
    %33 = vector.extract_strided_slice %11 {offsets = [1, 0], sizes = [1, 128], strides = [1, 1]} : vector<8x128xf32> to vector<1x128xf32>
    %cst_14 = arith.constant dense<0.000000e+00> : vector<1x128xf32>
    %34 = tpu.matmul %32, %12, %cst_14 {dimension_numbers = #tpu.dot_dimension_numbers<[1], [0], [0], [1], [0, 0, 1, 1], [], []>} : vector<1x32xf32>, vector<32x128xf32>, vector<1x128xf32> -> vector<1x128xf32>
    %35 = arith.addf %33, %34 : vector<1x128xf32>
    %36 = arith.negf %35 : vector<1x128xf32>
    %37 = math.exp %36 : vector<1x128xf32>
    %cst_15 = arith.constant 1.000000e+00 : f32
    %38 = vector.broadcast %cst_15 : f32 to vector<1x128xf32>
    %39 = arith.addf %38, %37 : vector<1x128xf32>
    %40 = arith.divf %38, %39 : vector<1x128xf32>
    %41 = math.tanh %35 : vector<1x128xf32>
    %42 = vector.extract_strided_slice %40 {offsets = [0, 0], sizes = [1, 32], strides = [1, 1]} : vector<1x128xf32> to vector<1x32xf32>
    %43 = vector.extract_strided_slice %40 {offsets = [0, 32], sizes = [1, 32], strides = [1, 1]} : vector<1x128xf32> to vector<1x32xf32>
    %44 = vector.extract_strided_slice %41 {offsets = [0, 64], sizes = [1, 32], strides = [1, 1]} : vector<1x128xf32> to vector<1x32xf32>
    %45 = vector.extract_strided_slice %40 {offsets = [0, 96], sizes = [1, 32], strides = [1, 1]} : vector<1x128xf32> to vector<1x32xf32>
    %46 = arith.mulf %43, %30 : vector<1x32xf32>
    %47 = arith.mulf %42, %44 : vector<1x32xf32>
    %48 = arith.addf %46, %47 : vector<1x32xf32>
    %49 = math.tanh %48 : vector<1x32xf32>
    %50 = arith.mulf %45, %49 : vector<1x32xf32>
    %51 = vector.extract_strided_slice %11 {offsets = [2, 0], sizes = [1, 128], strides = [1, 1]} : vector<8x128xf32> to vector<1x128xf32>
    %cst_16 = arith.constant dense<0.000000e+00> : vector<1x128xf32>
    %52 = tpu.matmul %50, %12, %cst_16 {dimension_numbers = #tpu.dot_dimension_numbers<[1], [0], [0], [1], [0, 0, 1, 1], [], []>} : vector<1x32xf32>, vector<32x128xf32>, vector<1x128xf32> -> vector<1x128xf32>
    %53 = arith.addf %51, %52 : vector<1x128xf32>
    %54 = arith.negf %53 : vector<1x128xf32>
    %55 = math.exp %54 : vector<1x128xf32>
    %cst_17 = arith.constant 1.000000e+00 : f32
    %56 = vector.broadcast %cst_17 : f32 to vector<1x128xf32>
    %57 = arith.addf %56, %55 : vector<1x128xf32>
    %58 = arith.divf %56, %57 : vector<1x128xf32>
    %59 = math.tanh %53 : vector<1x128xf32>
    %60 = vector.extract_strided_slice %58 {offsets = [0, 0], sizes = [1, 32], strides = [1, 1]} : vector<1x128xf32> to vector<1x32xf32>
    %61 = vector.extract_strided_slice %58 {offsets = [0, 32], sizes = [1, 32], strides = [1, 1]} : vector<1x128xf32> to vector<1x32xf32>
    %62 = vector.extract_strided_slice %59 {offsets = [0, 64], sizes = [1, 32], strides = [1, 1]} : vector<1x128xf32> to vector<1x32xf32>
    %63 = vector.extract_strided_slice %58 {offsets = [0, 96], sizes = [1, 32], strides = [1, 1]} : vector<1x128xf32> to vector<1x32xf32>
    %64 = arith.mulf %61, %48 : vector<1x32xf32>
    %65 = arith.mulf %60, %62 : vector<1x32xf32>
    %66 = arith.addf %64, %65 : vector<1x32xf32>
    %67 = math.tanh %66 : vector<1x32xf32>
    %68 = arith.mulf %63, %67 : vector<1x32xf32>
    %69 = vector.extract_strided_slice %11 {offsets = [3, 0], sizes = [1, 128], strides = [1, 1]} : vector<8x128xf32> to vector<1x128xf32>
    %cst_18 = arith.constant dense<0.000000e+00> : vector<1x128xf32>
    %70 = tpu.matmul %68, %12, %cst_18 {dimension_numbers = #tpu.dot_dimension_numbers<[1], [0], [0], [1], [0, 0, 1, 1], [], []>} : vector<1x32xf32>, vector<32x128xf32>, vector<1x128xf32> -> vector<1x128xf32>
    %71 = arith.addf %69, %70 : vector<1x128xf32>
    %72 = arith.negf %71 : vector<1x128xf32>
    %73 = math.exp %72 : vector<1x128xf32>
    %cst_19 = arith.constant 1.000000e+00 : f32
    %74 = vector.broadcast %cst_19 : f32 to vector<1x128xf32>
    %75 = arith.addf %74, %73 : vector<1x128xf32>
    %76 = arith.divf %74, %75 : vector<1x128xf32>
    %77 = math.tanh %71 : vector<1x128xf32>
    %78 = vector.extract_strided_slice %76 {offsets = [0, 0], sizes = [1, 32], strides = [1, 1]} : vector<1x128xf32> to vector<1x32xf32>
    %79 = vector.extract_strided_slice %76 {offsets = [0, 32], sizes = [1, 32], strides = [1, 1]} : vector<1x128xf32> to vector<1x32xf32>
    %80 = vector.extract_strided_slice %77 {offsets = [0, 64], sizes = [1, 32], strides = [1, 1]} : vector<1x128xf32> to vector<1x32xf32>
    %81 = vector.extract_strided_slice %76 {offsets = [0, 96], sizes = [1, 32], strides = [1, 1]} : vector<1x128xf32> to vector<1x32xf32>
    %82 = arith.mulf %79, %66 : vector<1x32xf32>
    %83 = arith.mulf %78, %80 : vector<1x32xf32>
    %84 = arith.addf %82, %83 : vector<1x32xf32>
    %85 = math.tanh %84 : vector<1x32xf32>
    %86 = arith.mulf %81, %85 : vector<1x32xf32>
    %87 = vector.extract_strided_slice %11 {offsets = [4, 0], sizes = [1, 128], strides = [1, 1]} : vector<8x128xf32> to vector<1x128xf32>
    %cst_20 = arith.constant dense<0.000000e+00> : vector<1x128xf32>
    %88 = tpu.matmul %86, %12, %cst_20 {dimension_numbers = #tpu.dot_dimension_numbers<[1], [0], [0], [1], [0, 0, 1, 1], [], []>} : vector<1x32xf32>, vector<32x128xf32>, vector<1x128xf32> -> vector<1x128xf32>
    %89 = arith.addf %87, %88 : vector<1x128xf32>
    %90 = arith.negf %89 : vector<1x128xf32>
    %91 = math.exp %90 : vector<1x128xf32>
    %cst_21 = arith.constant 1.000000e+00 : f32
    %92 = vector.broadcast %cst_21 : f32 to vector<1x128xf32>
    %93 = arith.addf %92, %91 : vector<1x128xf32>
    %94 = arith.divf %92, %93 : vector<1x128xf32>
    %95 = math.tanh %89 : vector<1x128xf32>
    %96 = vector.extract_strided_slice %94 {offsets = [0, 0], sizes = [1, 32], strides = [1, 1]} : vector<1x128xf32> to vector<1x32xf32>
    %97 = vector.extract_strided_slice %94 {offsets = [0, 32], sizes = [1, 32], strides = [1, 1]} : vector<1x128xf32> to vector<1x32xf32>
    %98 = vector.extract_strided_slice %95 {offsets = [0, 64], sizes = [1, 32], strides = [1, 1]} : vector<1x128xf32> to vector<1x32xf32>
    %99 = vector.extract_strided_slice %94 {offsets = [0, 96], sizes = [1, 32], strides = [1, 1]} : vector<1x128xf32> to vector<1x32xf32>
    %100 = arith.mulf %97, %84 : vector<1x32xf32>
    %101 = arith.mulf %96, %98 : vector<1x32xf32>
    %102 = arith.addf %100, %101 : vector<1x32xf32>
    %103 = math.tanh %102 : vector<1x32xf32>
    %104 = arith.mulf %99, %103 : vector<1x32xf32>
    %105 = vector.extract_strided_slice %11 {offsets = [5, 0], sizes = [1, 128], strides = [1, 1]} : vector<8x128xf32> to vector<1x128xf32>
    %cst_22 = arith.constant dense<0.000000e+00> : vector<1x128xf32>
    %106 = tpu.matmul %104, %12, %cst_22 {dimension_numbers = #tpu.dot_dimension_numbers<[1], [0], [0], [1], [0, 0, 1, 1], [], []>} : vector<1x32xf32>, vector<32x128xf32>, vector<1x128xf32> -> vector<1x128xf32>
    %107 = arith.addf %105, %106 : vector<1x128xf32>
    %108 = arith.negf %107 : vector<1x128xf32>
    %109 = math.exp %108 : vector<1x128xf32>
    %cst_23 = arith.constant 1.000000e+00 : f32
    %110 = vector.broadcast %cst_23 : f32 to vector<1x128xf32>
    %111 = arith.addf %110, %109 : vector<1x128xf32>
    %112 = arith.divf %110, %111 : vector<1x128xf32>
    %113 = math.tanh %107 : vector<1x128xf32>
    %114 = vector.extract_strided_slice %112 {offsets = [0, 0], sizes = [1, 32], strides = [1, 1]} : vector<1x128xf32> to vector<1x32xf32>
    %115 = vector.extract_strided_slice %112 {offsets = [0, 32], sizes = [1, 32], strides = [1, 1]} : vector<1x128xf32> to vector<1x32xf32>
    %116 = vector.extract_strided_slice %113 {offsets = [0, 64], sizes = [1, 32], strides = [1, 1]} : vector<1x128xf32> to vector<1x32xf32>
    %117 = vector.extract_strided_slice %112 {offsets = [0, 96], sizes = [1, 32], strides = [1, 1]} : vector<1x128xf32> to vector<1x32xf32>
    %118 = arith.mulf %115, %102 : vector<1x32xf32>
    %119 = arith.mulf %114, %116 : vector<1x32xf32>
    %120 = arith.addf %118, %119 : vector<1x32xf32>
    %121 = math.tanh %120 : vector<1x32xf32>
    %122 = arith.mulf %117, %121 : vector<1x32xf32>
    %123 = vector.extract_strided_slice %11 {offsets = [6, 0], sizes = [1, 128], strides = [1, 1]} : vector<8x128xf32> to vector<1x128xf32>
    %cst_24 = arith.constant dense<0.000000e+00> : vector<1x128xf32>
    %124 = tpu.matmul %122, %12, %cst_24 {dimension_numbers = #tpu.dot_dimension_numbers<[1], [0], [0], [1], [0, 0, 1, 1], [], []>} : vector<1x32xf32>, vector<32x128xf32>, vector<1x128xf32> -> vector<1x128xf32>
    %125 = arith.addf %123, %124 : vector<1x128xf32>
    %126 = arith.negf %125 : vector<1x128xf32>
    %127 = math.exp %126 : vector<1x128xf32>
    %cst_25 = arith.constant 1.000000e+00 : f32
    %128 = vector.broadcast %cst_25 : f32 to vector<1x128xf32>
    %129 = arith.addf %128, %127 : vector<1x128xf32>
    %130 = arith.divf %128, %129 : vector<1x128xf32>
    %131 = math.tanh %125 : vector<1x128xf32>
    %132 = vector.extract_strided_slice %130 {offsets = [0, 0], sizes = [1, 32], strides = [1, 1]} : vector<1x128xf32> to vector<1x32xf32>
    %133 = vector.extract_strided_slice %130 {offsets = [0, 32], sizes = [1, 32], strides = [1, 1]} : vector<1x128xf32> to vector<1x32xf32>
    %134 = vector.extract_strided_slice %131 {offsets = [0, 64], sizes = [1, 32], strides = [1, 1]} : vector<1x128xf32> to vector<1x32xf32>
    %135 = vector.extract_strided_slice %130 {offsets = [0, 96], sizes = [1, 32], strides = [1, 1]} : vector<1x128xf32> to vector<1x32xf32>
    %136 = arith.mulf %133, %120 : vector<1x32xf32>
    %137 = arith.mulf %132, %134 : vector<1x32xf32>
    %138 = arith.addf %136, %137 : vector<1x32xf32>
    %139 = math.tanh %138 : vector<1x32xf32>
    %140 = arith.mulf %135, %139 : vector<1x32xf32>
    %141 = vector.extract_strided_slice %11 {offsets = [7, 0], sizes = [1, 128], strides = [1, 1]} : vector<8x128xf32> to vector<1x128xf32>
    %cst_26 = arith.constant dense<0.000000e+00> : vector<1x128xf32>
    %142 = tpu.matmul %140, %12, %cst_26 {dimension_numbers = #tpu.dot_dimension_numbers<[1], [0], [0], [1], [0, 0, 1, 1], [], []>} : vector<1x32xf32>, vector<32x128xf32>, vector<1x128xf32> -> vector<1x128xf32>
    %143 = arith.addf %141, %142 : vector<1x128xf32>
    %144 = arith.negf %143 : vector<1x128xf32>
    %145 = math.exp %144 : vector<1x128xf32>
    %cst_27 = arith.constant 1.000000e+00 : f32
    %146 = vector.broadcast %cst_27 : f32 to vector<1x128xf32>
    %147 = arith.addf %146, %145 : vector<1x128xf32>
    %148 = arith.divf %146, %147 : vector<1x128xf32>
    %149 = math.tanh %143 : vector<1x128xf32>
    %150 = vector.extract_strided_slice %148 {offsets = [0, 0], sizes = [1, 32], strides = [1, 1]} : vector<1x128xf32> to vector<1x32xf32>
    %151 = vector.extract_strided_slice %148 {offsets = [0, 32], sizes = [1, 32], strides = [1, 1]} : vector<1x128xf32> to vector<1x32xf32>
    %152 = vector.extract_strided_slice %149 {offsets = [0, 64], sizes = [1, 32], strides = [1, 1]} : vector<1x128xf32> to vector<1x32xf32>
    %153 = vector.extract_strided_slice %148 {offsets = [0, 96], sizes = [1, 32], strides = [1, 1]} : vector<1x128xf32> to vector<1x32xf32>
    %154 = arith.mulf %151, %138 : vector<1x32xf32>
    %155 = arith.mulf %150, %152 : vector<1x32xf32>
    %156 = arith.addf %154, %155 : vector<1x32xf32>
    %157 = math.tanh %156 : vector<1x32xf32>
    %158 = arith.mulf %153, %157 : vector<1x32xf32>
    %159 = tpu.concatenate %32, %50, %68, %86, %104, %122, %140, %158 in 0 : vector<1x32xf32>, vector<1x32xf32>, vector<1x32xf32>, vector<1x32xf32>, vector<1x32xf32>, vector<1x32xf32>, vector<1x32xf32>, vector<1x32xf32> -> vector<8x32xf32>
    %c104 = arith.constant 104 : index
    %c0_28 = arith.constant 0 : index
    %160 = vector.load %arg4[%c104, %c0_28] : memref<264x128xf32, #tpu.memory_space<vmem>>, vector<32x32xf32>
    %cst_29 = arith.constant dense<0.000000e+00> : vector<8x32xf32>
    %161 = tpu.matmul %159, %160, %cst_29 {dimension_numbers = #tpu.dot_dimension_numbers<[1], [0], [0], [1], [0, 0, 1, 1], [], []>} : vector<8x32xf32>, vector<32x32xf32>, vector<8x32xf32> -> vector<8x32xf32>
    %c136 = arith.constant 136 : index
    %c0_30 = arith.constant 0 : index
    %162 = vector.load %arg4[%c136, %c0_30] : memref<264x128xf32, #tpu.memory_space<vmem>>, vector<1x32xf32>
    %163 = vector.broadcast %162 : vector<1x32xf32> to vector<8x32xf32>
    %164 = arith.addf %161, %163 : vector<8x32xf32>
    %165 = math.tanh %164 : vector<8x32xf32>
    %c144 = arith.constant 144 : index
    %c0_31 = arith.constant 0 : index
    %166 = vector.load %arg4[%c144, %c0_31] : memref<264x128xf32, #tpu.memory_space<vmem>>, vector<1x32xf32>
    %167 = vector.broadcast %166 : vector<1x32xf32> to vector<8x32xf32>
    %168 = arith.mulf %165, %167 : vector<8x32xf32>
    %cst_32 = arith.constant dense<0.000000e+00> : vector<8xf32>
    %169 = vector.multi_reduction <add>, %168, %cst_32 [1] : vector<8x32xf32> to vector<8xf32>
    %170 = vector.shape_cast %169 : vector<8xf32> to vector<8x1xf32>
    %cst_33 = arith.constant dense<0xFF800000> : vector<1xf32>
    %171 = vector.multi_reduction <maximumf>, %170, %cst_33 [0] : vector<8x1xf32> to vector<1xf32>
    %172 = vector.shape_cast %171 : vector<1xf32> to vector<1x1xf32>
    %173 = vector.broadcast %172 : vector<1x1xf32> to vector<8x1xf32>
    %174 = arith.subf %170, %173 : vector<8x1xf32>
    %175 = math.exp %174 : vector<8x1xf32>
    %cst_34 = arith.constant dense<0.000000e+00> : vector<1xf32>
    %176 = vector.multi_reduction <add>, %175, %cst_34 [0] : vector<8x1xf32> to vector<1xf32>
    %177 = vector.shape_cast %176 : vector<1xf32> to vector<1x1xf32>
    %178 = tpu.reciprocal %177 {approx = true} : vector<1x1xf32> -> vector<1x1xf32>
    %179 = vector.broadcast %178 : vector<1x1xf32> to vector<8x1xf32>
    %180 = arith.mulf %175, %179 : vector<8x1xf32>
    %181 = vector.broadcast %180 : vector<8x1xf32> to vector<8x32xf32>
    %182 = arith.mulf %181, %159 : vector<8x32xf32>
    %cst_35 = arith.constant dense<0.000000e+00> : vector<32xf32>
    %183 = vector.multi_reduction <add>, %182, %cst_35 [0] : vector<8x32xf32> to vector<32xf32>
    %184 = vector.shape_cast %183 : vector<32xf32> to vector<1x32xf32>
    %185 = tpu.concatenate %184, %158 in 1 : vector<1x32xf32>, vector<1x32xf32> -> vector<1x64xf32>
    %c152 = arith.constant 152 : index
    %c0_36 = arith.constant 0 : index
    %186 = vector.load %arg4[%c152, %c0_36] : memref<264x128xf32, #tpu.memory_space<vmem>>, vector<64x32xf32>
    %cst_37 = arith.constant dense<0.000000e+00> : vector<1x32xf32>
    %187 = tpu.matmul %185, %186, %cst_37 {dimension_numbers = #tpu.dot_dimension_numbers<[1], [0], [0], [1], [0, 0, 1, 1], [], []>} : vector<1x64xf32>, vector<64x32xf32>, vector<1x32xf32> -> vector<1x32xf32>
    %c216 = arith.constant 216 : index
    %c0_38 = arith.constant 0 : index
    %188 = vector.load %arg4[%c216, %c0_38] : memref<264x128xf32, #tpu.memory_space<vmem>>, vector<1x32xf32>
    %189 = arith.addf %187, %188 : vector<1x32xf32>
    %190 = math.tanh %189 : vector<1x32xf32>
    %c224 = arith.constant 224 : index
    %c0_39 = arith.constant 0 : index
    %191 = vector.load %arg4[%c224, %c0_39] : memref<264x128xf32, #tpu.memory_space<vmem>>, vector<32x128xf32>
    %cst_40 = arith.constant dense<0.000000e+00> : vector<1x128xf32>
    %192 = tpu.matmul %190, %191, %cst_40 {dimension_numbers = #tpu.dot_dimension_numbers<[1], [0], [0], [1], [0, 0, 1, 1], [], []>} : vector<1x32xf32>, vector<32x128xf32>, vector<1x128xf32> -> vector<1x128xf32>
    %c256 = arith.constant 256 : index
    %c0_41 = arith.constant 0 : index
    %193 = vector.load %arg4[%c256, %c0_41] : memref<264x128xf32, #tpu.memory_space<vmem>>, vector<1x128xf32>
    %194 = arith.addf %192, %193 : vector<1x128xf32>
    %c0_42 = arith.constant 0 : index
    %c0_43 = arith.constant 0 : index
    %195 = vector.load %arg5[%c0_42, %c0_43] : memref<1x128xf32, #tpu.memory_space<vmem>>, vector<1x128xf32>
    tpu.vector_store %arg5[%c0_42, %c0_43], %194 {strides = array<i32>} : memref<1x128xf32, #tpu.memory_space<vmem>>, vector<1x128xf32>,
    return
  }
  func.func @transform_0(%arg0: i32, %arg1: memref<1xi32, #tpu.memory_space<smem>>) -> (i32, i32, i32) {
    %c0 = arith.constant 0 : index
    %0 = memref.load %arg1[%c0] : memref<1xi32, #tpu.memory_space<smem>>
    %c0_i32 = arith.constant 0 : i32
    %c0_i32_0 = arith.constant 0 : i32
    %c0_i32_1 = arith.constant 0 : i32
    return %0, %c0_i32, %c0_i32_0 : i32, i32, i32
  }
  func.func @transform_1(%arg0: i32, %arg1: memref<1xi32, #tpu.memory_space<smem>>) -> (i32, i32) {
    %c0_i32 = arith.constant 0 : i32
    %c0_i32_0 = arith.constant 0 : i32
    %c0_i32_1 = arith.constant 0 : i32
    return %c0_i32, %c0_i32_0 : i32, i32
  }
  func.func @transform_2(%arg0: i32, %arg1: memref<1xi32, #tpu.memory_space<smem>>) -> (i32, i32) {
    %c0_i32 = arith.constant 0 : i32
    %c0_i32_0 = arith.constant 0 : i32
    %c0_i32_1 = arith.constant 0 : i32
    return %c0_i32, %c0_i32_0 : i32, i32
  }
  func.func @transform_3(%arg0: i32, %arg1: memref<1xi32, #tpu.memory_space<smem>>) -> (i32, i32) {
    %c0_i32 = arith.constant 0 : i32
    %c0_i32_0 = arith.constant 0 : i32
    %c0_i32_1 = arith.constant 0 : i32
    return %c0_i32, %c0_i32_0 : i32, i32
  }
}

</mosaic_0001>

<bundles_post_ra>
// kernel: forward.1
= control target key start
LH: loop header
LB: loop body
LE: loop exit
PB: predicated region body
PF: predicated region fallthrough
CT: control target
= control target key end

     0   :  { %10 = vsyncpa [#allocation5], 0  ;;  %s2053_s0 = inlined_call_operand.<no memory space> [shape: s32[1], index: 0, kind: input, shape index: {}]   ;;  %s2054_s1 = inlined_call_operand.vmem [shape: f32[5,1,32], index: 1, kind: input, shape index: {}]   ;;  %s2055_s2 = inlined_call_operand.vmem [shape: f32[8,32], index: 2, kind: input, shape index: {}]   ;;  %s2056_s3 = inlined_call_operand.hbm [shape: f32[264,128], index: 3, kind: input, shape index: {}]   ;;  %s2057_s4 = inlined_call_operand.hbm [shape: f32[1,128], index: 4, kind: output, shape index: {}]  }
   0x1   :  { %11 = vsyncpa [#allocation6], 0  ;;  %s1843_s15 = smov [#allocation4]   ;;  %s1795_s19 = scalar_lea.hbm %s2056_s3, 4224 }
   0x2   :  { %s26_s16 = sshll.u32 %s1843_s15, 4  ;;  %p1796_p0 = scmp.ne.s32.totalorder %s2056_s3, %s1795_s19  ;;  %s27_s16 = int_to_ptr.vmem [resolvable:$true] %s26_s16 }
   0x3   :  { %p1799_p1 = scmp.lt.u32.totalorder %s1795_s19, %s2056_s3 }
   0x5   :  { %p1801_p2 = pnand %p1799_p1, %p1796_p0 }
   0x7   :  { %1804 = shalt.err (!%p1801_p2)
}
   0x8   :  { %s1805_s24 = scalar_lea.vmem %s27_s16, 4224  ;;  %p1810_p4 = scmp.lt.s32.totalorder %s27_s16, %s27_s16 }
   0x9   :  { %p1806_p3 = scmp.ne.s32.totalorder %s27_s16, %s1805_s24  ;;  %p1811_p5 = scmp.lt.s32.totalorder %s1805_s24, %s1805_s24 }
   0xb   :  { %p1812_p6 = por %p1811_p5, %p1810_p4 }
   0xd   :  { %p1813_p7 = pnand %p1812_p6, %p1806_p3 }
   0xf   :  { %1816 = shalt.err (!%p1813_p7)
}
  0x10   :  { %s1844_s25 = smov 128   ;;  %s1845_s26 = smov 8  }
  0x11   :  { %32 = dma.hbm_to_vmem [thread:$0]  %s2056_s3, 4224, %s27_s16, [#allocation5], %s1844_s25, %s1844_s25, %s1845_s26  }
  0x12   :  { %1839 = dma.done.wait [#allocation5], 4224  }
  0x13   :  { %1840 = vsyncadd [#allocation5], 4294963072  ;;  %v1846_v0 = vmov 0.0|0.0   ;;  %vm1847_vm0 = vmmov 0   ;;  %v1848_v1 = vmov 0.0   ;;  %p41_p8 = scmp.lt.s32.totalorder %s2053_s0, 4  ;;  %v129_v22 = vlaneseq }
  0x14   :  { %1630 = vmatprep.subr.bf16.mxu0 %v1846_v0  ;;  %1636 = vmatprep.subr.bf16.mxu1 %v1846_v0  ;;  %v51_v2 = vld [vmem:[#allocation4 + $0x20] sm:$0xff]  ;;  %v52_v3 = vld [vmem:[#allocation4 + $0x28] sm:$0xff]  ;;  %v53_v7 = vld [vmem:[#allocation4 + $0x30] sm:$0xff]  ;;  %vm55_vm1 = vcmask 261120   ;;  %vm1062_vm2 = vcmask 1040384   ;;  %vm1064_vm3 = vcmask 1041408  }
  0x15   :  { %1487 = vmatprep.mubr.msk.f32.mxu0 %vm1847_vm0, %v1848_v1  ;;  %1498 = vmatprep.mubr.msk.f32.mxu1 %vm1847_vm0, %v1848_v1  ;;  %v47_v4 = vld [vmem:[#allocation4] sm:$0xff]  ;;  %s2059_s0 = smov (!%p41_p8, %s2053_s0), 4  ;;  %v1631_v5 = vpack.c.bf16 %v52_v3, %v51_v2  ;;  %v48_v6 = vld [vmem:[#allocation4 + $0x8] sm:$0xff]  ;;  %v54_v8 = vld [vmem:[#allocation4 + $0x38] sm:$0xff]  ;;  %v130_v23 = vshrl.u32 %v129_v22, 7  ;;  %vm1066_vm4 = vcmask 1042432  }
  0x16   :  { %v1637_v9 = vpack.c.bf16 %v48_v6, %v47_v4  ;;  %v49_v10 = vld [vmem:[#allocation4 + $0x10] sm:$0xff]  ;;  %v50_v11 = vld [vmem:[#allocation4 + $0x18] sm:$0xff]  ;;  %v1634_v12 = vpack.c.bf16 %v54_v8, %v53_v7  ;;  %s43_s8 = scalar_lea.vmem %s2054_s1, %s2059_s0  ;;  %v212_v14 = vld [vmem:[#allocation4 + $0x48] sm:$0xff]  ;;  %s1849_s0 = smov 64   ;;  %vm1068_vm5 = vcmask 1043456   ;;  %vm1070_vm6 = vcmask 1044480  }
  0x17   :  { %1632 = vmatpush3.bf16.msra.mxu0 %v1631_v5  ;;  %v1640_v13 = vpack.c.bf16 %v50_v11, %v49_v10  ;;  %v213_v15 = vld [vmem:[#allocation4 + $0x50] sm:$0xff]  ;;  %v45_v16 = vld [vmem:[%s43_s8] sm:$0x1]  ;;  %v214_v19 = vld [vmem:[#allocation4 + $0x58] sm:$0xff]  ;;  %v131_v24 = vsub.s32 0, %v130_v23  ;;  %s1850_s1 = smov 32  }
  0x18   :  { %1633 = vmatprep.subr.bf16.mxu0 %v1846_v0  ;;  %1638 = vmatpush3.bf16.msra.mxu1 %v1637_v9  ;;  %v1906_v17 = vpack.c.bf16 %v213_v15, %v212_v14  ;;  %v46_v18 = vld [vmem:[%s2055_s2] sm:$0xff]  ;;  %vm1072_vm7 = vcmask 1045504   ;;  %vm1074_vm8 = vcmask 1046528   ;;  %vm1188_vm9 = vcmask 1048320   ;;  %s1851_s2 = smov [#allocation7]  }
  0x19   :  { %1639 = vmatprep.subr.bf16.mxu1 %v1846_v0  ;;  %v215_v20 = vld [vmem:[#allocation4 + $0x60] sm:$0xff]  ;;  %vm1215_vm10 = vcmask 523264   ;;  %s1375_s11 = sshll.u32 %s1851_s2, 4  ;;  %s1376_s11 = int_to_ptr.vmem [resolvable:$true] %s1375_s11 }
  0x1a   :  { %v1916_v21 = vpack.c.bf16 %v215_v20, %v214_v19  ;;  %v1389_v29 = vld [vmem:[#allocation4 + $0x40] ss:$0 sm:$0xff]  ;;  %s1817_s12 = scalar_lea.vmem %s1376_s11, 16  ;;  %s1821_s13 = scalar_lea.vmem %s1376_s11, 32 }
  0x1b   :  { %1635 = vmatpush3.bf16.msra.mxu0 %v1634_v12  ;;  %p1818_p9 = scmp.ne.s32.totalorder %s1376_s11, %s1817_s12  ;;  %p1822_p10 = scmp.lt.s32.totalorder %s1376_s11, %s1376_s11 }
  0x1c   :  { %1641 = vmatpush3.bf16.msra.mxu1 %v1640_v13  ;;  %1642 = vmatprep.subr.bf16.mxu0 %v1846_v0  ;;  %p1823_p11 = scmp.lt.s32.totalorder %s1821_s13, %s1817_s12 }
  0x1d   :  { %1648 = vmatprep.subr.bf16.mxu1 %v1846_v0 }
  0x1e   :  { %1488 = vmatmul.mubr.msk.f32.vlgmr.msra.gmra.mrb[0].mxu0 %vm55_vm1, %v45_v16  ;;  %p1824_p12 = por %p1823_p11, %p1822_p10 }
  0x1f   :  { %1644 = vmatpush3.bf16.msra.mxu0 %v1906_v17  ;;  %1499 = vmatmul.mubr.msk.f32.vlgmr.msra.gmra.mrb[0].mxu1 %vm55_vm1, %v46_v18 }
  0x20   :  { %1645 = vmatprep.subr.bf16.mxu0 %v1846_v0  ;;  %1509 = vmatprep.mubr.msk.f32.mxu0 %vm1847_vm0, %v1848_v1  ;;  %p1825_p13 = pnand %p1824_p12, %p1818_p9 }
  0x21   :  { %1650 = vmatpush3.bf16.msra.mxu1 %v1906_v17  ;;  %1520 = vmatprep.mubr.msk.f32.mxu1 %vm1847_vm0, %v1848_v1 }
  0x22   :  { %1651 = vmatprep.subr.bf16.mxu1 %v1846_v0 }
  0x23   :  { %1647 = vmatpush3.bf16.msra.mxu0 %v1916_v21 }
  0x24   :  { %1654 = vmatprep.subr.bf16.mxu0 %v1846_v0 }
  0x25   :  { %1653 = vmatpush3.bf16.msra.mxu1 %v1916_v21 }
  0x26   :  { %1510 = vmatmul.mubr.f32.vlgmr.msra.gmra.mrb[2].mxu0 %v1848_v1  ;;  %1660 = vmatprep.subr.bf16.mxu1 %v1846_v0 }
  0x27   :  { %1656 = vmatpush3.bf16.msra.mxu0 %v1906_v17  ;;  %1531 = vmatprep.mubr.msk.f32.mxu0 %vm1847_vm0, %v1848_v1 }
  0x28   :  { %1657 = vmatprep.subr.bf16.mxu0 %v1846_v0 }
  0x2b   :  { %1659 = vmatpush3.bf16.msra.mxu0 %v1916_v21 }
  0x2c   :  { %1666 = vmatprep.subr.bf16.mxu0 %v1846_v0 }
  0xf1   :  { %v125_v25 = vpop.f32.mrb[0].mxu0 }
  0xf2   :  { %v132_v26 = vrot.slane %v125_v25, %v131_v24  ;;  %v1489_v27 = vpop.f32.mrb[1].mxu0  ;;  %v202_v28 = vpop.f32.mrb[0].mxu1 }
  0xf3   :  { %v1500_v30 = vpop.f32.mrb[1].mxu1 }
  0xf4   :  { %v203_v31 = vadd.f32 %v202_v28, %v132_v26 }
  0xf6   :  { %v1936_v32 = vadd.f32 %v1389_v29, %v203_v31 }
  0xf9   :  { %v285_v33 = vpop.f32.mrb[2].mxu0 }
  0xfa   :  { %v289_v34 = vadd.f32 %v285_v33, %v1936_v32  ;;  %v1511_v35 = vpop.f32.mrb[3].mxu0 }
  0xfc   :  { %1723 = vtanh.f32 %v289_v34  ;;  %v1390_v37 = vmul.f32 -1.442695, %v289_v34 }
  0xfe   :  { %1725 = vpow2.f32 %v1390_v37 }
 0x106   :  { %v1724_v36 = vpop.eup %1723 }
 0x107   :  { %299 = vrot.lane.b32.xlu0 %v1724_v36, %s1849_s0 }
 0x108   :  { %v1726_v38 = vpop.eup %1725 }
 0x109   :  { %v293_v39 = vadd.f32 1.0, %v1726_v38 }
 0x10b   :  { %1727 = vrcp.f32 %v293_v39 }
 0x115   :  { %v1728_v40 = vpop.eup %1727 }
 0x116   :  { %v297_v43 = vmul.f32 0.0, %v1728_v40 }
 0x179   :  { %v300_v41 = vpop.permute.xlu0 %299 }
 0x17a   :  { %v302_v42 = vmul.f32 %v1728_v40, %v300_v41 }
 0x17c   :  { %304 = vrot.lane.b32.xlu0 %v302_v42, %s1850_s1 }
 0x1ee   :  { %v305_v44 = vpop.permute.xlu0 %304 }
 0x1ef   :  { %v307_v45 = vadd.f32 %v305_v44, %v297_v43 }
 0x1f1   :  { %1729 = vtanh.f32 %v307_v45  ;;  %v401_v61 = vrot.slane %v307_v45, 7 }
 0x1fb   :  { %v1730_v46 = vpop.eup %1729 }
 0x1fc   :  { %310 = vrot.lane.b32.xlu1 %v1730_v46, %s1849_s0 }
 0x26e   :  { %v311_v47 = vpop.permute.xlu1 %310 }
 0x26f   :  { %v1942_v48 = vmul.f32 %v1728_v40, %v311_v47 }
 0x271   :  { %315 = vrot.lane.b32.xlu1 %v1942_v48, %s1850_s1 }
 0x2e3   :  { %v316_v49 = vpop.permute.xlu1 %315 }
 0x2e4   :  { %1521 = vmatmul.mubr.msk.f32.vlgmr.msra.gmra.mrb[2].mxu1 %vm55_vm1, %v316_v49 }
 0x2e5   :  { %1662 = vmatpush3.bf16.msra.mxu1 %v1906_v17  ;;  %1542 = vmatprep.mubr.msk.f32.mxu1 %vm1847_vm0, %v1848_v1 }
 0x2e6   :  { %1663 = vmatprep.subr.bf16.mxu1 %v1846_v0 }
 0x2e9   :  { %1665 = vmatpush3.bf16.msra.mxu1 %v1916_v21 }
 0x2ea   :  { %1672 = vmatprep.subr.bf16.mxu1 %v1846_v0 }
 0x3b7   :  { %v385_v50 = vpop.f32.mrb[2].mxu1 }
 0x3b8   :  { %v390_v51 = vrot.slane %v385_v50, 7  ;;  %v1522_v52 = vpop.f32.mrb[3].mxu1 }
 0x3ba   :  { %v392_v53 = vadd.f32 %v390_v51, %v1936_v32 }
 0x3bc   :  { %1731 = vtanh.f32 %v392_v53  ;;  %v1392_v55 = vmul.f32 -1.442695, %v392_v53 }
 0x3be   :  { %1733 = vpow2.f32 %v1392_v55 }
 0x3c6   :  { %v1732_v54 = vpop.eup %1731 }
 0x3c7   :  { %405 = vrot.lane.b32.xlu0 %v1732_v54, %s1849_s0 }
 0x3c8   :  { %v1734_v56 = vpop.eup %1733 }
 0x3c9   :  { %v396_v57 = vadd.f32 1.0, %v1734_v56 }
 0x3cb   :  { %1735 = vrcp.f32 %v396_v57 }
 0x3d5   :  { %v1736_v58 = vpop.eup %1735 }
 0x3d6   :  { %v403_v62 = vmul.f32 %v1736_v58, %v401_v61 }
 0x439   :  { %v406_v59 = vpop.permute.xlu0 %405 }
 0x43a   :  { %v408_v60 = vmul.f32 %v1736_v58, %v406_v59 }
 0x43c   :  { %410 = vrot.lane.b32.xlu1 %v408_v60, %s1850_s1 }
 0x4ae   :  { %v411_v63 = vpop.permute.xlu1 %410 }
 0x4af   :  { %v413_v2 = vadd.f32 %v411_v63, %v403_v62 }
 0x4b1   :  { %1737 = vtanh.f32 %v413_v2  ;;  %v508_v20 = vrot.slane %v413_v2, 7 }
 0x4bb   :  { %v1738_v3 = vpop.eup %1737 }
 0x4bc   :  { %416 = vrot.lane.b32.xlu0 %v1738_v3, %s1849_s0 }
 0x52e   :  { %v417_v4 = vpop.permute.xlu0 %416 }
 0x52f   :  { %v419_v5 = vmul.f32 %v1736_v58, %v417_v4 }
 0x531   :  { %v421_v6 = vrot.slane %v419_v5, 1  ;;  %v1063_v28 = vsel %vm1062_vm2, %v1942_v48, %v419_v5 }
 0x533   :  { %422 = vrot.lane.b32.xlu1 %v421_v6, %s1850_s1 }
 0x5a5   :  { %v423_v7 = vpop.permute.xlu1 %422 }
 0x5a6   :  { %1532 = vmatmul.mubr.msk.f32.vlgmr.msra.gmra.mrb[4].mxu0 %vm55_vm1, %v423_v7 }
 0x5a7   :  { %1668 = vmatpush3.bf16.msra.mxu0 %v1906_v17  ;;  %1553 = vmatprep.mubr.msk.f32.mxu0 %vm1847_vm0, %v1848_v1 }
 0x5a8   :  { %1669 = vmatprep.subr.bf16.mxu0 %v1846_v0 }
 0x5ab   :  { %1671 = vmatpush3.bf16.msra.mxu0 %v1916_v21 }
 0x5ac   :  { %1678 = vmatprep.subr.bf16.mxu0 %v1846_v0 }
 0x679   :  { %v492_v8 = vpop.f32.mrb[4].mxu0 }
 0x67a   :  { %v497_v9 = vrot.slane %v492_v8, 6  ;;  %v1533_v10 = vpop.f32.mrb[5].mxu0 }
 0x67c   :  { %v499_v11 = vadd.f32 %v497_v9, %v1936_v32 }
 0x67e   :  { %1739 = vtanh.f32 %v499_v11  ;;  %v1394_v13 = vmul.f32 -1.442695, %v499_v11 }
 0x680   :  { %1741 = vpow2.f32 %v1394_v13 }
 0x688   :  { %v1740_v12 = vpop.eup %1739 }
 0x689   :  { %512 = vrot.lane.b32.xlu0 %v1740_v12, %s1849_s0 }
 0x68a   :  { %v1742_v14 = vpop.eup %1741 }
 0x68b   :  { %v503_v15 = vadd.f32 1.0, %v1742_v14 }
 0x68d   :  { %1743 = vrcp.f32 %v503_v15 }
 0x697   :  { %v1744_v16 = vpop.eup %1743 }
 0x698   :  { %v510_v22 = vmul.f32 %v1744_v16, %v508_v20 }
 0x6fb   :  { %v513_v18 = vpop.permute.xlu0 %512 }
 0x6fc   :  { %v515_v19 = vmul.f32 %v1744_v16, %v513_v18 }
 0x6fe   :  { %517 = vrot.lane.b32.xlu1 %v515_v19, %s1850_s1 }
 0x770   :  { %v518_v23 = vpop.permute.xlu1 %517 }
 0x771   :  { %v520_v24 = vadd.f32 %v518_v23, %v510_v22 }
 0x773   :  { %1745 = vtanh.f32 %v520_v24  ;;  %v615_v44 = vrot.slane %v520_v24, 7 }
 0x77d   :  { %v1746_v25 = vpop.eup %1745 }
 0x77e   :  { %523 = vrot.lane.b32.xlu0 %v1746_v25, %s1849_s0 }
 0x7f0   :  { %v524_v26 = vpop.permute.xlu0 %523 }
 0x7f1   :  { %v526_v27 = vmul.f32 %v1744_v16, %v524_v26 }
 0x7f3   :  { %v528_v29 = vrot.slane %v526_v27, 2  ;;  %v1065_v30 = vsel %vm1064_vm3, %v1063_v28, %v526_v27 }
 0x7f5   :  { %529 = vrot.lane.b32.xlu1 %v528_v29, %s1850_s1 }
 0x867   :  { %v530_v31 = vpop.permute.xlu1 %529 }
 0x868   :  { %1543 = vmatmul.mubr.msk.f32.vlgmr.msra.gmra.mrb[4].mxu1 %vm55_vm1, %v530_v31 }
 0x869   :  { %1674 = vmatpush3.bf16.msra.mxu1 %v1906_v17  ;;  %1564 = vmatprep.mubr.msk.f32.mxu1 %vm1847_vm0, %v1848_v1 }
 0x86a   :  { %1675 = vmatprep.subr.bf16.mxu1 %v1846_v0 }
 0x86d   :  { %1677 = vmatpush3.bf16.msra.mxu1 %v1916_v21 }
 0x86e   :  { %1684 = vmatprep.subr.bf16.mxu1 %v1846_v0 }
 0x93b   :  { %v599_v33 = vpop.f32.mrb[4].mxu1 }
 0x93c   :  { %v604_v34 = vrot.slane %v599_v33, 5  ;;  %v1544_v35 = vpop.f32.mrb[5].mxu1 }
 0x93e   :  { %v606_v36 = vadd.f32 %v604_v34, %v1936_v32 }
 0x940   :  { %1747 = vtanh.f32 %v606_v36  ;;  %v1396_v38 = vmul.f32 -1.442695, %v606_v36 }
 0x942   :  { %1749 = vpow2.f32 %v1396_v38 }
 0x94a   :  { %v1748_v37 = vpop.eup %1747 }
 0x94b   :  { %619 = vrot.lane.b32.xlu0 %v1748_v37, %s1849_s0 }
 0x94c   :  { %v1750_v39 = vpop.eup %1749 }
 0x94d   :  { %v610_v40 = vadd.f32 1.0, %v1750_v39 }
 0x94f   :  { %1751 = vrcp.f32 %v610_v40 }
 0x959   :  { %v1752_v41 = vpop.eup %1751 }
 0x95a   :  { %v617_v45 = vmul.f32 %v1752_v41, %v615_v44 }
 0x9bd   :  { %v620_v42 = vpop.permute.xlu0 %619 }
 0x9be   :  { %v622_v43 = vmul.f32 %v1752_v41, %v620_v42 }
 0x9c0   :  { %624 = vrot.lane.b32.xlu1 %v622_v43, %s1850_s1 }
 0xa32   :  { %v625_v46 = vpop.permute.xlu1 %624 }
 0xa33   :  { %v627_v47 = vadd.f32 %v625_v46, %v617_v45 }
 0xa35   :  { %1753 = vtanh.f32 %v627_v47  ;;  %v722_v3 = vrot.slane %v627_v47, 7 }
 0xa3f   :  { %v1754_v48 = vpop.eup %1753 }
 0xa40   :  { %630 = vrot.lane.b32.xlu0 %v1754_v48, %s1849_s0 }
 0xab2   :  { %v631_v49 = vpop.permute.xlu0 %630 }
 0xab3   :  { %v633_v50 = vmul.f32 %v1752_v41, %v631_v49 }
 0xab5   :  { %v635_v51 = vrot.slane %v633_v50, 3  ;;  %v1067_v52 = vsel %vm1066_vm4, %v1065_v30, %v633_v50 }
 0xab7   :  { %636 = vrot.lane.b32.xlu1 %v635_v51, %s1850_s1 }
 0xb29   :  { %v637_v53 = vpop.permute.xlu1 %636 }
 0xb2a   :  { %1554 = vmatmul.mubr.msk.f32.vlgmr.msra.gmra.mrb[6].mxu0 %vm55_vm1, %v637_v53 }
 0xb2b   :  { %1680 = vmatpush3.bf16.msra.mxu0 %v1906_v17  ;;  %1575 = vmatprep.mubr.msk.f32.mxu0 %vm1847_vm0, %v1848_v1 }
 0xb2c   :  { %1681 = vmatprep.subr.bf16.mxu0 %v1846_v0 }
 0xb2f   :  { %1683 = vmatpush3.bf16.msra.mxu0 %v1916_v21 }
 0xb30   :  { %1690 = vmatprep.subr.bf16.mxu0 %v1846_v0 }
 0xbfd   :  { %v706_v54 = vpop.f32.mrb[6].mxu0 }
 0xbfe   :  { %v711_v55 = vrot.slane %v706_v54, 4  ;;  %v1555_v56 = vpop.f32.mrb[7].mxu0 }
 0xc00   :  { %v713_v57 = vadd.f32 %v711_v55, %v1936_v32 }
 0xc02   :  { %1755 = vtanh.f32 %v713_v57  ;;  %v1398_v59 = vmul.f32 -1.442695, %v713_v57 }
 0xc04   :  { %1757 = vpow2.f32 %v1398_v59 }
 0xc0c   :  { %v1756_v58 = vpop.eup %1755 }
 0xc0d   :  { %726 = vrot.lane.b32.xlu0 %v1756_v58, %s1849_s0 }
 0xc0e   :  { %v1758_v60 = vpop.eup %1757 }
 0xc0f   :  { %v717_v61 = vadd.f32 1.0, %v1758_v60 }
 0xc11   :  { %1759 = vrcp.f32 %v717_v61 }
 0xc1b   :  { %v1760_v62 = vpop.eup %1759 }
 0xc1c   :  { %v724_v4 = vmul.f32 %v1760_v62, %v722_v3 }
 0xc7f   :  { %v727_v63 = vpop.permute.xlu0 %726 }
 0xc80   :  { %v729_v2 = vmul.f32 %v1760_v62, %v727_v63 }
 0xc82   :  { %731 = vrot.lane.b32.xlu1 %v729_v2, %s1850_s1 }
 0xcf4   :  { %v732_v5 = vpop.permute.xlu1 %731 }
 0xcf5   :  { %v734_v6 = vadd.f32 %v732_v5, %v724_v4 }
 0xcf7   :  { %1761 = vtanh.f32 %v734_v6 }
 0xd01   :  { %v1762_v7 = vpop.eup %1761 }
 0xd02   :  { %737 = vrot.lane.b32.xlu0 %v1762_v7, %s1849_s0 }
 0xd74   :  { %v738_v8 = vpop.permute.xlu0 %737 }
 0xd75   :  { %v740_v9 = vmul.f32 %v1760_v62, %v738_v8 }
 0xd77   :  { %v742_v10 = vrot.slane %v740_v9, 4  ;;  %v1069_v11 = vsel %vm1068_vm5, %v1067_v52, %v740_v9  ;;  %v1077_v9 = vld [vmem:[#allocation4 + $0x70] sm:$0xff] }
 0xd79   :  { %743 = vrot.lane.b32.xlu1 %v742_v10, %s1850_s1  ;;  %v1078_v10 = vld [vmem:[#allocation4 + $0x78] sm:$0xff] }
 0xdeb   :  { %v744_v12 = vpop.permute.xlu1 %743 }
 0xdec   :  { %1565 = vmatmul.mubr.msk.f32.vlgmr.msra.gmra.mrb[6].mxu1 %vm55_vm1, %v744_v12  ;;  %v1079_v12 = vld [vmem:[#allocation4 + $0x80] sm:$0xff] }
 0xded   :  { %1686 = vmatpush3.bf16.msra.mxu1 %v1906_v17  ;;  %1586 = vmatprep.mubr.msk.f32.mxu1 %vm1847_vm0, %v1848_v1 }
 0xdee   :  { %1687 = vmatprep.subr.bf16.mxu1 %v1846_v0 }
 0xdf1   :  { %1689 = vmatpush3.bf16.msra.mxu1 %v1916_v21  ;;  %v829_v21 = vrot.slane %v734_v6, 7 }
 0xdf2   :  { %1696 = vmatprep.subr.bf16.mxu1 %v1846_v0 }
 0xebf   :  { %v813_v13 = vpop.f32.mrb[6].mxu1 }
 0xec0   :  { %v818_v14 = vrot.slane %v813_v13, 3  ;;  %v1566_v15 = vpop.f32.mrb[7].mxu1  ;;  %v1694_v13 = vpack.c.bf16 %v1079_v12, %v1078_v10  ;;  %v1293_v10 = vld [vmem:[#allocation4 + $0xf8] sm:$0xff] }
 0xec1   :  { %v1214_v12 = vld [vmem:[#allocation4 + $0xd8] sm:$0x1] }
 0xec2   :  { %v820_v16 = vadd.f32 %v818_v14, %v1936_v32 }
 0xec4   :  { %1763 = vtanh.f32 %v820_v16  ;;  %v1400_v19 = vmul.f32 -1.442695, %v820_v16 }
 0xec6   :  { %1765 = vpow2.f32 %v1400_v19 }
 0xece   :  { %v1764_v18 = vpop.eup %1763 }
 0xecf   :  { %833 = vrot.lane.b32.xlu0 %v1764_v18, %s1849_s0 }
 0xed0   :  { %v1766_v17 = vpop.eup %1765 }
 0xed1   :  { %v824_v20 = vadd.f32 1.0, %v1766_v17  ;;  %v1405_v17 = vld [vmem:[#allocation4 + $0x88] ss:$0 sm:$0xff] }
 0xed3   :  { %1767 = vrcp.f32 %v824_v20 }
 0xedd   :  { %v1768_v22 = vpop.eup %1767 }
 0xede   :  { %v831_v25 = vmul.f32 %v1768_v22, %v829_v21 }
 0xf41   :  { %v834_v23 = vpop.permute.xlu0 %833 }
 0xf42   :  { %v836_v24 = vmul.f32 %v1768_v22, %v834_v23 }
 0xf44   :  { %838 = vrot.lane.b32.xlu1 %v836_v24, %s1850_s1  ;;  %v1407_v24 = vld [vmem:[#allocation4 + $0x90] ss:$0 sm:$0xff] }
 0xfb6   :  { %v839_v26 = vpop.permute.xlu1 %838 }
 0xfb7   :  { %v841_v27 = vadd.f32 %v839_v26, %v831_v25 }
 0xfb9   :  { %1769 = vtanh.f32 %v841_v27  ;;  %v936_v46 = vrot.slane %v841_v27, 7  ;;  %v1206_v27 = vld [vmem:[#allocation4 + $0x98] sm:$0xff] }
 0xfc3   :  { %v1770_v28 = vpop.eup %1769 }
 0xfc4   :  { %844 = vrot.lane.b32.xlu0 %v1770_v28, %s1849_s0  ;;  %v1207_v28 = vld [vmem:[#allocation4 + $0xa0] sm:$0xff] }
0x1036   :  { %v845_v29 = vpop.permute.xlu0 %844 }
0x1037   :  { %v847_v30 = vmul.f32 %v1768_v22, %v845_v29  ;;  %v1208_v29 = vld [vmem:[#allocation4 + $0xa8] sm:$0xff] }
0x1039   :  { %v849_v31 = vrot.slane %v847_v30, 5  ;;  %v1071_v33 = vsel %vm1070_vm6, %v1069_v11, %v847_v30  ;;  %v1697_v30 = vpack.c.bf16 %v1207_v28, %v1206_v27 }
0x103b   :  { %850 = vrot.lane.b32.xlu1 %v849_v31, %s1850_s1  ;;  %v1209_v31 = vld [vmem:[#allocation4 + $0xb0] sm:$0xff] }
0x10ad   :  { %v851_v34 = vpop.permute.xlu1 %850 }
0x10ae   :  { %1576 = vmatmul.mubr.msk.f32.vlgmr.msra.gmra.mrb[8].mxu0 %vm55_vm1, %v851_v34  ;;  %v1211_v34 = vld [vmem:[#allocation4 + $0xc0] sm:$0xff] }
0x10af   :  { %1597 = vmatprep.mubr.msk.f32.mxu0 %vm1847_vm0, %v1848_v1 }
0x1181   :  { %v920_v35 = vpop.f32.mrb[8].mxu0 }
0x1182   :  { %v925_v36 = vrot.slane %v920_v35, 2  ;;  %v1577_v37 = vpop.f32.mrb[9].mxu0 }
0x1184   :  { %v927_v38 = vadd.f32 %v925_v36, %v1936_v32 }
0x1186   :  { %1771 = vtanh.f32 %v927_v38  ;;  %v1402_v40 = vmul.f32 -1.442695, %v927_v38 }
0x1188   :  { %1773 = vpow2.f32 %v1402_v40 }
0x1190   :  { %v1772_v39 = vpop.eup %1771 }
0x1191   :  { %940 = vrot.lane.b32.xlu0 %v1772_v39, %s1849_s0 }
0x1192   :  { %v1774_v41 = vpop.eup %1773 }
0x1193   :  { %v931_v42 = vadd.f32 1.0, %v1774_v41 }
0x1195   :  { %1775 = vrcp.f32 %v931_v42 }
0x119f   :  { %v1776_v43 = vpop.eup %1775 }
0x11a0   :  { %v938_v47 = vmul.f32 %v1776_v43, %v936_v46 }
0x1203   :  { %v941_v44 = vpop.permute.xlu0 %940 }
0x1204   :  { %v943_v45 = vmul.f32 %v1776_v43, %v941_v44 }
0x1206   :  { %945 = vrot.lane.b32.xlu1 %v943_v45, %s1850_s1 }
0x1278   :  { %v946_v48 = vpop.permute.xlu1 %945 }
0x1279   :  { %v948_v49 = vadd.f32 %v946_v48, %v938_v47 }
0x127b   :  { %1777 = vtanh.f32 %v948_v49  ;;  %v1043_v5 = vrot.slane %v948_v49, 7 }
0x1285   :  { %v1778_v50 = vpop.eup %1777 }
0x1286   :  { %951 = vrot.lane.b32.xlu0 %v1778_v50, %s1849_s0 }
0x12f8   :  { %v952_v51 = vpop.permute.xlu0 %951 }
0x12f9   :  { %v954_v52 = vmul.f32 %v1776_v43, %v952_v51 }
0x12fb   :  { %v956_v53 = vrot.slane %v954_v52, 6  ;;  %v1073_v54 = vsel %vm1072_vm7, %v1071_v33, %v954_v52  ;;  %v1700_v33 = vpack.c.bf16 %v1209_v31, %v1208_v29 }
0x12fd   :  { %957 = vrot.lane.b32.xlu1 %v956_v53, %s1850_s1 }
0x136f   :  { %v958_v55 = vpop.permute.xlu1 %957 }
0x1370   :  { %1587 = vmatmul.mubr.msk.f32.vlgmr.msra.gmra.mrb[8].mxu1 %vm55_vm1, %v958_v55  ;;  %v1212_v55 = vld [vmem:[#allocation4 + $0xc8] sm:$0xff] }
0x1371   :  { %1616 = vmatprep.mubr.msk.f32.mxu1 %vm1847_vm0, %v1848_v1  ;;  %1698 = vmatpush3.bf16.msra.mxu1 %v1697_v30 }
0x1372   :  { %1699 = vmatprep.subr.bf16.mxu1 %v1846_v0 }
0x1375   :  { %1701 = vmatpush3.bf16.msra.mxu1 %v1700_v33 }
0x1376   :  { %1702 = vmatprep.subr.bf16.mxu1 %v1846_v0 }
0x1443   :  { %v1027_v56 = vpop.f32.mrb[8].mxu1 }
0x1444   :  { %v1032_v57 = vrot.slane %v1027_v56, 1  ;;  %v1588_v58 = vpop.f32.mrb[9].mxu1  ;;  %v1213_v56 = vld [vmem:[#allocation4 + $0xd0] sm:$0xff] }
0x1445   :  { %v1706_v58 = vpack.c.bf16 %v1213_v56, %v1212_v55 }
0x1446   :  { %v1034_v59 = vadd.f32 %v1032_v57, %v1936_v32  ;;  %v1076_v32 = vld [vmem:[#allocation4 + $0x68] sm:$0xff] }
0x1447   :  { %v1691_v11 = vpack.c.bf16 %v1077_v9, %v1076_v32  ;;  %v1292_v32 = vld [vmem:[#allocation4 + $0xf0] sm:$0xff] }
0x1448   :  { %1779 = vtanh.f32 %v1034_v59  ;;  %v1404_v61 = vmul.f32 -1.442695, %v1034_v59 }
0x1449   :  { %1692 = vmatpush3.bf16.msra.mxu0 %v1691_v11  ;;  %v1712_v11 = vpack.c.bf16 %v1293_v10, %v1292_v32 }
0x144a   :  { %1781 = vpow2.f32 %v1404_v61  ;;  %1693 = vmatprep.subr.bf16.mxu0 %v1846_v0 }
0x144d   :  { %1695 = vmatpush3.bf16.msra.mxu0 %v1694_v13 }
0x144e   :  { %1708 = vmatprep.subr.bf16.mxu0 %v1846_v0 }
0x1452   :  { %v1780_v60 = vpop.eup %1779 }
0x1453   :  { %1047 = vrot.lane.b32.xlu0 %v1780_v60, %s1849_s0 }
0x1454   :  { %v1782_v62 = vpop.eup %1781 }
0x1455   :  { %v1038_v63 = vadd.f32 1.0, %v1782_v62 }
0x1457   :  { %1783 = vrcp.f32 %v1038_v63 }
0x1461   :  { %v1784_v2 = vpop.eup %1783 }
0x1462   :  { %v1045_v6 = vmul.f32 %v1784_v2, %v1043_v5 }
0x14c5   :  { %v1048_v3 = vpop.permute.xlu0 %1047 }
0x14c6   :  { %v1050_v4 = vmul.f32 %v1784_v2, %v1048_v3 }
0x14c8   :  { %1052 = vrot.lane.b32.xlu1 %v1050_v4, %s1850_s1 }
0x153a   :  { %v1053_v7 = vpop.permute.xlu1 %1052 }
0x153b   :  { %v1055_v8 = vadd.f32 %v1053_v7, %v1045_v6  ;;  %v1290_v7 = vld [vmem:[#allocation4 + $0xe0] sm:$0xff] }
0x153d   :  { %1785 = vtanh.f32 %v1055_v8  ;;  %v1291_v8 = vld [vmem:[#allocation4 + $0xe8] sm:$0xff] }
0x153e   :  { %v1709_v9 = vpack.c.bf16 %v1291_v8, %v1290_v7 }
0x1547   :  { %v1786_v14 = vpop.eup %1785 }
0x1548   :  { %1058 = vrot.lane.b32.xlu0 %v1786_v14, %s1849_s0 }
0x15ba   :  { %v1059_v15 = vpop.permute.xlu0 %1058 }
0x15bb   :  { %v2024_v16 = vmul.f32 %v1784_v2, %v1059_v15 }
0x15bd   :  { %v1075_v18 = vsel %vm1074_vm8, %v1073_v54, %v2024_v16  ;;  %v1201_v3 = vrot.slane %v2024_v16, 7 }
0x15be   :  { %1086 = vrot.lane.b32.xlu1 %v1075_v18, %s1850_s1 }
0x1630   :  { %v1087_v19 = vpop.permute.xlu1 %1086 }
0x1631   :  { %1598 = vmatmul.mubr.msk.f32.vlgmr.msra.gmra.mrb[10].mxu0 %vm55_vm1, %v1087_v19 }
0x1632   :  { %1627 = vmatprep.mubr.msk.f32.mxu0 %vm1847_vm0, %v1848_v1  ;;  %v1210_v1 = vld [vmem:[#allocation4 + $0xb8] sm:$0xff]  ;;  %1710 = vmatpush3.bf16.msra.mxu0 %v1709_v9 }
0x1633   :  { %v1703_v35 = vpack.c.bf16 %v1211_v34, %v1210_v1  ;;  %1711 = vmatprep.subr.bf16.mxu0 %v1846_v0 }
0x1635   :  { %1704 = vmatpush3.bf16.msra.mxu1 %v1703_v35 }
0x1636   :  { %1705 = vmatprep.subr.bf16.mxu1 %v1846_v0  ;;  %1713 = vmatpush3.bf16.msra.mxu0 %v1712_v11 }
0x1639   :  { %1707 = vmatpush3.bf16.msra.mxu1 %v1706_v58 }
0x1704   :  { %v1156_v20 = vpop.f32.mrb[10].mxu0 }
0x1705   :  { %v1157_v22 = vadd.f32 %v1405_v17, %v1156_v20  ;;  %v1599_v23 = vpop.f32.mrb[11].mxu0 }
0x1707   :  { %1787 = vtanh.f32 %v1157_v22 }
0x1711   :  { %v1788_v21 = vpop.eup %1787 }
0x1712   :  { %v1166_v25 = vmul.f32 %v1788_v21, %v1407_v24 }
0x1714   :  { %v1167_v26 = vsel %vm55_vm1, %v1166_v25, 0.0 }
0x1715   :  { %1168 = vadd.xlane.f32.xlu0 %v1167_v26 }
0x17a2   :  { %v1169_v36 = vpop.xlane.xlu0 %1168 }
0x17a3   :  { %v1170_v37 = vrot.slane %v1169_v36, 4 }
0x17a5   :  { %v1171_v38 = vmax.f32 %v1169_v36, %v1170_v37 }
0x17a7   :  { %v1172_v39 = vrot.slane %v1171_v38, 2 }
0x17a9   :  { %v1173_v40 = vmax.f32 %v1171_v38, %v1172_v39 }
0x17ab   :  { %v1174_v41 = vrot.slane %v1173_v40, 1 }
0x17ad   :  { %v1175_v42 = vmax.f32 %v1173_v40, %v1174_v41 }
0x17af   :  { %v1176_v43 = vsub.f32 %v1169_v36, %v1175_v42 }
0x17b1   :  { %v1177_v44 = vmul.f32 1.442695, %v1176_v43 }
0x17b3   :  { %1789 = vpow2.f32 %v1177_v44 }
0x17bd   :  { %v1790_v45 = vpop.eup %1789 }
0x17be   :  { %v1179_v46 = vrot.slane %v1790_v45, 4 }
0x17c0   :  { %v1180_v47 = vadd.f32 %v1790_v45, %v1179_v46 }
0x17c2   :  { %v1181_v48 = vrot.slane %v1180_v47, 2 }
0x17c4   :  { %v1182_v49 = vadd.f32 %v1181_v48, %v1180_v47 }
0x17c6   :  { %v1183_v50 = vrot.slane %v1182_v49, 1 }
0x17c8   :  { %v1184_v51 = vadd.f32 %v1183_v50, %v1182_v49 }
0x17ca   :  { %1791 = vrcp.f32 %v1184_v51 }
0x17d4   :  { %v1792_v52 = vpop.eup %1791 }
0x17d5   :  { %v1186_v53 = vmul.f32 %v1792_v52, %v1790_v45 }
0x17d7   :  { %v1187_v54 = vmul.f32 %v1186_v53, %v1075_v18  ;;  %v1294_v18 = vld [vmem:[#allocation4 + $0x100] sm:$0x1] }
0x17d9   :  { %v1189_v57 = vsel %vm1188_vm9, %v1187_v54, 0.0 }
0x17da   :  { %v1190_v59 = vrot.slane %v1189_v57, 4 }
0x17dc   :  { %v1191_v60 = vadd.f32 %v1190_v59, %v1189_v57 }
0x17de   :  { %v1192_v61 = vrot.slane %v1191_v60, 2 }
0x17e0   :  { %v1193_v62 = vadd.f32 %v1192_v61, %v1191_v60 }
0x17e2   :  { %v1194_v63 = vrot.slane %v1193_v62, 1 }
0x17e4   :  { %v1195_v2 = vadd.f32 %v1194_v63, %v1193_v62 }
0x17e6   :  { %1197 = vrot.lane.b32.xlu1 %v1195_v2, %s1850_s1 }
0x17ea   :  { %1202 = vrot.lane.b32.xlu1 %v1201_v3, %s1849_s0 }
0x1858   :  { %v1198_v4 = vpop.permute.xlu1 %1197 }
0x185c   :  { %v1203_v5 = vpop.permute.xlu1 %1202 }
0x185d   :  { %v1205_v6 = vsel %vm55_vm1, %v1198_v4, %v1203_v5 }
0x185e   :  { %1617 = vmatmul.mubr.msk.f32.vlgmr.msra.gmra.mrb[10].mxu1 %vm1215_vm10, %v1205_v6 }
0x1931   :  { %v1285_v13 = vpop.f32.mrb[10].mxu1 }
0x1932   :  { %v1286_v14 = vadd.f32 %v1285_v13, %v1214_v12  ;;  %v1618_v15 = vpop.f32.mrb[11].mxu1 }
0x1934   :  { %1793 = vtanh.f32 %v1286_v14 }
0x193e   :  { %v1794_v16 = vpop.eup %1793 }
0x193f   :  { %1628 = vmatmul.mubr.msk.f32.vlgmr.msra.gmra.mrb[12].mxu0 %vm55_vm1, %v1794_v16 }
0x1a12   :  { %v1364_v19 = vpop.f32.mrb[12].mxu0 }
0x1a13   :  { %v1365_v17 = vadd.f32 %v1364_v19, %v1294_v18  ;;  %v1629_v20 = vpop.f32.mrb[13].mxu0 }
0x1a15   :  { %1368 = vst [vmem:[#allocation7] sm:$0x1] %v1365_v17 }
0x1a16   :  { %1828 = shalt.err (!%p1825_p13)
}
0x1a17   :  { %s1829_s16 = scalar_lea.hbm %s2057_s4, 16 }
0x1a18   :  { %p1830_p0 = scmp.ne.s32.totalorder %s2057_s4, %s1829_s16  ;;  %p1833_p1 = scmp.lt.u32.totalorder %s1829_s16, %s2057_s4 }
0x1a1a   :  { %p1835_p2 = pnand %p1833_p1, %p1830_p0 }
0x1a1c   :  { %1838 = shalt.err (!%p1835_p2)
}
0x1a1d   :  { %1378 = dma.vmem_to_hbm [thread:$0]  %s1376_s11, 16, %s2057_s4, [#allocation6]  }
0x1a1e   :  { %1841 = dma.done.wait [#allocation6], 16  }
0x1a1f   :  { %1842 = vsyncadd [#allocation6], 4294967280 }
0x1a20   :  { %1382 = vsyncpa [#allocation5], 1 }
0x1a21   :  { %1383 = vsyncpa [#allocation6], 1 }

</bundles_post_ra>
